<compile_context>
chip_gen: v7x
topology: tpu7x:2x2x1
jax: 0.10.0
libtpu: 0.0.40
codegen_flags: <defaults>
</compile_context>

<pallas_src>
import functools

import jax
import jax.numpy as jnp
from jax import lax
from jax.experimental import pallas as pl
from jax.experimental.pallas import tpu as pltpu

_EPS_NORM_SQ = 1e-24   # (F.normalize eps = 1e-12)^2, used under rsqrt
_EPS_LOG = 1e-12       # log(sum_exp + 1e-12) in nt_xent_loss


# ----------------------------------------------------------------------------
# Fused kernel
# ----------------------------------------------------------------------------
def _dual_loss_kernel(cls_ref, lab_ref, pred_ref, tcol_ref, trow_ref,   # inputs
                      out_ref,                                          # output (SMEM)
                      col_max, col_sumexp, col_dot, col_cnt, acc_smem,  # scratch
                      *, alpha, temp):
    """One row-tile of the fused DualLoss.

    cls_ref:  [B, Dp]      all cls features (columns of sim), resident
    lab_ref:  [tq, C, Dp]  label features for this row tile
    pred_ref: [tq, C]      logits for this row tile
    tcol_ref: [tq, 1]      int32 targets for this row tile
    trow_ref: [1, B]       int32 targets for all columns
    out_ref:  [1]          f32 total loss (SMEM), written on last tile
    col_*:    [1, B]       f32 online column accumulators (cl2 == sim.T losses)
    acc_smem: [2]          f32 scalar accumulators: [cl1 pos_logits sum, CE sum]
    """
    i = pl.program_id(0)
    nrt = pl.num_programs(0)
    tq = tcol_ref.shape[0]
    batch = trow_ref.shape[1]
    num_cls = lab_ref.shape[1]

    @pl.when(i == 0)
    def _init():
        col_max[...] = jnp.full_like(col_max, -jnp.inf)
        col_sumexp[...] = jnp.zeros_like(col_sumexp)
        col_dot[...] = jnp.zeros_like(col_dot)
        col_cnt[...] = jnp.zeros_like(col_cnt)
        acc_smem[0] = jnp.float32(0.0)   # cl1 (row-wise) pos_logits sum
        acc_smem[1] = jnp.float32(0.0)   # cross-entropy sum

    tcol = tcol_ref[...]                                   # [tq, 1]
    trow = trow_ref[...]                                   # [1, B]

    # ---- L2 normalize (f32 math, rsqrt -> EUP) ------------------------------
    cls = cls_ref[...].astype(jnp.float32)                                  # [B, Dp]
    cls = cls * lax.rsqrt(jnp.maximum(jnp.sum(cls * cls, axis=-1, keepdims=True),
                                      _EPS_NORM_SQ))

    # Positive (target-class) label feature per row: in-kernel one-hot select.
    # Statically unrolled over classes (num_classes is small for this module).
    # TODO(synk): for large num_classes switch to a scalar-prefetch row gather.
    pos = jnp.zeros((tq, cls.shape[1]), jnp.float32)
    for c in range(num_cls):
        sel = (tcol == c).astype(jnp.float32)                               # [tq, 1]
        pos = pos + sel * lab_ref[:, c, :].astype(jnp.float32)              # [tq, Dp]
    pos = pos * lax.rsqrt(jnp.maximum(jnp.sum(pos * pos, axis=-1, keepdims=True),
                                      _EPS_NORM_SQ))

    # ---- single similarity tile (bf16 MXU operands, f32 accumulation) -------
    sim = lax.dot_general(pos.astype(jnp.bfloat16), cls.astype(jnp.bfloat16),
                          (((1,), (1,)), ((), ())),
                          preferred_element_type=jnp.float32) * (1.0 / temp)  # [tq, B]

    row_ids = i * tq + lax.broadcasted_iota(jnp.int32, (tq, batch), 0)  # global rows
    col_ids = lax.broadcasted_iota(jnp.int32, (tq, batch), 1)
    diag = row_ids == col_ids
    sim = jnp.where(diag, 0.0, sim)                     # sim - diag_embed(diag(sim))
    mask_f = ((tcol == trow) & (~diag)).astype(jnp.float32)

    # ---- cl_loss_1: row-wise masked log-softmax (rows complete in this tile) -
    rmax = jnp.max(sim, axis=1, keepdims=True)                              # [tq, 1]
    rlogd = jnp.log(jnp.sum(jnp.exp(sim - rmax), axis=1, keepdims=True) + _EPS_LOG)
    rcnt = jnp.sum(mask_f, axis=1, keepdims=True)
    rnum = jnp.sum(mask_f * (sim - rmax), axis=1, keepdims=True) - rcnt * rlogd
    rpos = rnum / jnp.where(rcnt == 0.0, 1.0, rcnt)                         # [tq, 1]
    acc_smem[0] += jnp.sum(rpos)

    # ---- cl_loss_2: column-wise == row-wise on sim.T (online accumulation) --
    tmax = jnp.max(sim, axis=0, keepdims=True)                              # [1, B]
    new_max = jnp.maximum(col_max[...], tmax)
    col_sumexp[...] = (col_sumexp[...] * jnp.exp(col_max[...] - new_max)
                       + jnp.sum(jnp.exp(sim - new_max), axis=0, keepdims=True))
    col_max[...] = new_max
    col_dot[...] += jnp.sum(mask_f * sim, axis=0, keepdims=True)
    col_cnt[...] += jnp.sum(mask_f, axis=0, keepdims=True)

    # ---- cross-entropy for this row tile ------------------------------------
    x = pred_ref[...].astype(jnp.float32)                                    # [tq, C]
    cid = lax.broadcasted_iota(jnp.int32, (tq, num_cls), 1)
    onehot = (cid == tcol).astype(jnp.float32)
    xmax = jnp.max(x, axis=1, keepdims=True)
    lse = jnp.log(jnp.sum(jnp.exp(x - xmax), axis=1, keepdims=True)) + xmax
    picked = jnp.sum(x * onehot, axis=1, keepdims=True)
    acc_smem[1] += jnp.sum(lse - picked)

    # ---- finalize on the last row tile ---------------------------------------
    @pl.when(i == nrt - 1)
    def _finalize():
        cnt = col_cnt[...]
        clogd = jnp.log(col_sumexp[...] + _EPS_LOG)
        cnum = col_dot[...] - cnt * (col_max[...] + clogd)
        cpos = cnum / jnp.where(cnt == 0.0, 1.0, cnt)                        # [1, B]
        inv_b = 1.0 / float(batch)
        cl_sum = acc_smem[0] + jnp.sum(cpos)          # sum of pos_logits (cl1 + cl2)
        total = ((1.0 - alpha) * acc_smem[1] * inv_b   # CE mean
                 - 0.5 * alpha * inv_b * cl_sum)       # -0.5*alpha*(mean1 + mean2)
        out_ref[0] = total


# ----------------------------------------------------------------------------
# Wrapper
# ----------------------------------------------------------------------------
def dual_loss_pallas(cls_feats, label_feats, predicts, targets, *, alpha, temp):
    """DualLoss.forward:
       ce  = (1 - alpha) * CE(predicts, targets)
       cl1 = 0.5 * alpha * nt_xent(pos_label_feats, cls_feats, targets)
       cl2 = 0.5 * alpha * nt_xent(cls_feats, pos_label_feats, targets)
    """
    B, D = cls_feats.shape
    _, C, _ = label_feats.shape
    assert label_feats.shape == (B, C, D)
    assert predicts.shape == (B, C)
    assert targets.shape == (B,)

    # Lane-dense feature dim: zero-pad D to a multiple of 128 (does not change
    # L2 norms or dot products).
    Dp = ((D + 127) // 128) * 128
    if Dp != D:
        cls_feats = jnp.pad(cls_feats, ((0, 0), (0, Dp - D)))
        label_feats = jnp.pad(label_feats, ((0, 0), (0, 0), (0, Dp - D)))

    # Row tile: whole batch if it is small; otherwise the largest divisor of B
    # that is <= 256 and a multiple of 8 (sublane-aligned second-minor dims).
    if B <= 256:
        tq = B
    else:
        cands = [t for t in range(256, 7, -1) if B % t == 0 and t % 8 == 0]
        tq = cands[0] if cands else B   # TODO(synk): handle ragged B with masking
    nrt = B // tq

    tcol = targets.reshape(B, 1).astype(jnp.int32)
    trow = targets.reshape(1, B).astype(jnp.int32)

    kernel = functools.partial(_dual_loss_kernel, alpha=float(alpha), temp=float(temp))

    out = pl.pallas_call(
        kernel,
        out_shape=jax.ShapeDtypeStruct((1,), jnp.float32),
        grid_spec=pltpu.PrefetchScalarGridSpec(
            num_scalar_prefetch=0,
            grid=(nrt,),
            in_specs=[
                pl.BlockSpec((B, Dp), lambda i: (0, 0)),          # cls feats (columns)
                pl.BlockSpec((tq, C, Dp), lambda i: (i, 0, 0)),   # label feats row tile
                pl.BlockSpec((tq, C), lambda i: (i, 0)),          # predicts row tile
                pl.BlockSpec((tq, 1), lambda i: (i, 0)),          # row-tile targets
                pl.BlockSpec((1, B), lambda i: (0, 0)),           # all targets (columns)
            ],
            out_specs=pl.BlockSpec(memory_space=pltpu.MemorySpace.SMEM),
            scratch_shapes=[
                pltpu.VMEM((1, B), jnp.float32),   # col running max
                pltpu.VMEM((1, B), jnp.float32),   # col running sum of exp
                pltpu.VMEM((1, B), jnp.float32),   # col sum of mask*sim
                pltpu.VMEM((1, B), jnp.float32),   # col mask count
                pltpu.SMEM((2,), jnp.float32),     # [cl1 pos_logits sum, CE sum]
            ],
        ),
        compiler_params=pltpu.CompilerParams(
            # The row axis carries the cl2/CE accumulators -> must be "arbitrary".
            dimension_semantics=("arbitrary",),
            vmem_limit_bytes=32 * 1024 * 1024,
        ),
    )(cls_feats, label_feats, predicts, tcol, trow)
    return out[0]


# ----------------------------------------------------------------------------
# Pure-JAX reference (mirrors the PyTorch code) for a sanity check
# ----------------------------------------------------------------------------
def _ref_dual_loss(cls_feats, label_feats, predicts, targets, *, alpha, temp,
                   mxu_dtype=jnp.float32):
    B, C, D = label_feats.shape

    def normalize(x):
        return x / jnp.maximum(jnp.linalg.norm(x, axis=-1, keepdims=True), 1e-12)

    ncls = normalize(cls_feats)
    nlab = normalize(label_feats)
    idx = jnp.broadcast_to(targets.reshape(B, 1, 1).astype(jnp.int32), (B, 1, D))
    pos = jnp.take_along_axis(nlab, idx, axis=1)[:, 0, :]

    lse = jax.nn.logsumexp(predicts, axis=1)
    picked = jnp.take_along_axis(predicts, targets.reshape(B, 1), axis=1)[:, 0]
    ce = jnp.mean(lse - picked)

    def nt(anchor, target, labels):
        mask = labels[:, None] == labels[None, :]
        eye = jnp.eye(B, dtype=bool)
        mask = (mask & ~eye).astype(jnp.float32)
        sim = jnp.dot(anchor.astype(mxu_dtype), target.astype(mxu_dtype).T,
                      preferred_element_type=jnp.float32) / temp
        sim = jnp.where(eye, 0.0, sim)
        lmax = jnp.max(sim, axis=1, keepdims=True)
        lg = sim - lmax
        el = jnp.exp(lg)
        lg = lg * mask
        lp = lg - jnp.log(jnp.sum(el, axis=1, keepdims=True) + 1e-12)
        ms = jnp.sum(mask, axis=1)
        ms = jnp.where(ms == 0, 1.0, ms)
        return -jnp.mean(jnp.sum(mask * lp, axis=1) / ms)

    return ((1.0 - alpha) * ce
            + 0.5 * alpha * nt(pos, ncls, targets)
            + 0.5 * alpha * nt(ncls, pos, targets))


# ----------------------------------------------------------------------------
if __name__ == "__main__":
    ALPHA = 0.5
    TEMP = 0.1
    B, NUM_CLASSES, D = 8, 4, 32

    key = jax.random.PRNGKey(0)
    k1, k2, k3, k4 = jax.random.split(key, 4)
    cls_feats = jax.random.normal(k1, (B, D), dtype=jnp.float32)
    label_feats = jax.random.normal(k2, (B, NUM_CLASSES, D), dtype=jnp.float32)
    predicts = jax.random.normal(k3, (B, NUM_CLASSES), dtype=jnp.float32)
    targets = jax.random.randint(k4, (B,), 0, NUM_CLASSES, dtype=jnp.int32)

    loss = jax.jit(
        functools.partial(dual_loss_pallas, alpha=ALPHA, temp=TEMP)
    )(cls_feats, label_feats, predicts, targets)
    loss = jax.block_until_ready(loss)

    # Tight check against a reference that mirrors the kernel's precision
    # choice (bf16 MXU operands, f32 accumulation).
    ref_bf16 = _ref_dual_loss(cls_feats, label_feats, predicts, targets,
                              alpha=ALPHA, temp=TEMP, mxu_dtype=jnp.bfloat16)
    assert jnp.allclose(loss, ref_bf16, rtol=2e-3, atol=2e-3), (loss, ref_bf16)

    # Loose check against the exact f32 PyTorch-equivalent reference (the only
    # difference is bf16 rounding of the matmul operands).
    ref_f32 = _ref_dual_loss(cls_feats, label_feats, predicts, targets,
                             alpha=ALPHA, temp=TEMP, mxu_dtype=jnp.float32)
    assert jnp.allclose(loss, ref_f32, rtol=5e-2, atol=5e-2), (loss, ref_f32)

    print("KERNEL_OK")
</pallas_src>

<mosaic_0001>
module attributes {stable_mosaic.version = 11 : i64} {
  func.func @_dual_loss_kernel(%arg0: i32, %arg1: memref<8x128xf32, #tpu.memory_space<vmem>>, %arg2: memref<8x4x128xf32, #tpu.memory_space<vmem>>, %arg3: memref<8x4xf32, #tpu.memory_space<vmem>>, %arg4: memref<8x1xi32, #tpu.memory_space<vmem>>, %arg5: memref<1x8xi32, #tpu.memory_space<vmem>>, %arg6: memref<1xf32, #tpu.memory_space<smem>>, %arg7: memref<1x8xf32, #tpu.memory_space<vmem>>, %arg8: memref<1x8xf32, #tpu.memory_space<vmem>>, %arg9: memref<1x8xf32, #tpu.memory_space<vmem>>, %arg10: memref<1x8xf32, #tpu.memory_space<vmem>>, %arg11: memref<2xf32, #tpu.memory_space<smem>>) attributes {dimension_semantics = [#tpu.dimension_semantics<arbitrary>], iteration_bounds = array<i64: 1>, scalar_prefetch = 0 : i64, scratch_operands = 5 : i64, tpu.core_type = #tpu.core_type<tc>, window_params = [{pipeline_mode = #tpu.pipeline_mode<synchronous>, transform_indices = @transform_0, window_bounds = array<i64: 8, 128>}, {transform_indices = @transform_1, window_bounds = array<i64: 8, 4, 128>}, {transform_indices = @transform_2, window_bounds = array<i64: 8, 4>}, {transform_indices = @transform_3, window_bounds = array<i64: 8, 1>}, {pipeline_mode = #tpu.pipeline_mode<synchronous>, transform_indices = @transform_4, window_bounds = array<i64: 1, 8>}, {transform_indices = @transform_5, window_bounds = array<i64: 1>}]} {
    %c0_i32 = arith.constant 0 : i32
    %0 = arith.cmpi eq, %arg0, %c0_i32 : i32
    %1 = arith.extui %0 : i1 to i32
    %c0_i32_0 = arith.constant 0 : i32
    %2 = arith.cmpi ne, %1, %c0_i32_0 : i32
    scf.if %2 {
      %cst_66 = arith.constant 0xFF800000 : f32
      %167 = vector.broadcast %cst_66 : f32 to vector<1x8xf32>
      %c0_67 = arith.constant 0 : index
      %c0_68 = arith.constant 0 : index
      %168 = vector.load %arg7[%c0_67, %c0_68] : memref<1x8xf32, #tpu.memory_space<vmem>>, vector<1x8xf32>
      tpu.vector_store %arg7[%c0_67, %c0_68], %167 {strides = array<i32>} : memref<1x8xf32, #tpu.memory_space<vmem>>, vector<1x8xf32>,
      %cst_69 = arith.constant 0.000000e+00 : f32
      %169 = vector.broadcast %cst_69 : f32 to vector<1x8xf32>
      %c0_70 = arith.constant 0 : index
      %c0_71 = arith.constant 0 : index
      %170 = vector.load %arg8[%c0_70, %c0_71] : memref<1x8xf32, #tpu.memory_space<vmem>>, vector<1x8xf32>
      tpu.vector_store %arg8[%c0_70, %c0_71], %169 {strides = array<i32>} : memref<1x8xf32, #tpu.memory_space<vmem>>, vector<1x8xf32>,
      %cst_72 = arith.constant 0.000000e+00 : f32
      %171 = vector.broadcast %cst_72 : f32 to vector<1x8xf32>
      %c0_73 = arith.constant 0 : index
      %c0_74 = arith.constant 0 : index
      %172 = vector.load %arg9[%c0_73, %c0_74] : memref<1x8xf32, #tpu.memory_space<vmem>>, vector<1x8xf32>
      tpu.vector_store %arg9[%c0_73, %c0_74], %171 {strides = array<i32>} : memref<1x8xf32, #tpu.memory_space<vmem>>, vector<1x8xf32>,
      %cst_75 = arith.constant 0.000000e+00 : f32
      %173 = vector.broadcast %cst_75 : f32 to vector<1x8xf32>
      %c0_76 = arith.constant 0 : index
      %c0_77 = arith.constant 0 : index
      %174 = vector.load %arg10[%c0_76, %c0_77] : memref<1x8xf32, #tpu.memory_space<vmem>>, vector<1x8xf32>
      tpu.vector_store %arg10[%c0_76, %c0_77], %173 {strides = array<i32>} : memref<1x8xf32, #tpu.memory_space<vmem>>, vector<1x8xf32>,
      %cst_78 = arith.constant 0.000000e+00 : f32
      %c0_79 = arith.constant 0 : index
      %175 = memref.load %arg11[%c0_79] : memref<2xf32, #tpu.memory_space<smem>>
      memref.store %cst_78, %arg11[%c0_79] : memref<2xf32, #tpu.memory_space<smem>>
      %cst_80 = arith.constant 0.000000e+00 : f32
      %c1_81 = arith.constant 1 : index
      %176 = memref.load %arg11[%c1_81] : memref<2xf32, #tpu.memory_space<smem>>
      memref.store %cst_80, %arg11[%c1_81] : memref<2xf32, #tpu.memory_space<smem>>
    } else {
    }
    %c0 = arith.constant 0 : index
    %c0_1 = arith.constant 0 : index
    %3 = vector.load %arg4[%c0, %c0_1] : memref<8x1xi32, #tpu.memory_space<vmem>>, vector<8x1xi32>
    %c0_2 = arith.constant 0 : index
    %c0_3 = arith.constant 0 : index
    %4 = vector.load %arg5[%c0_2, %c0_3] : memref<1x8xi32, #tpu.memory_space<vmem>>, vector<1x8xi32>
    %c0_4 = arith.constant 0 : index
    %c0_5 = arith.constant 0 : index
    %5 = vector.load %arg1[%c0_4, %c0_5] : memref<8x128xf32, #tpu.memory_space<vmem>>, vector<8x128xf32>
    %6 = arith.mulf %5, %5 : vector<8x128xf32>
    %cst = arith.constant dense<0.000000e+00> : vector<8xf32>
    %7 = vector.multi_reduction <add>, %6, %cst [1] : vector<8x128xf32> to vector<8xf32>
    %8 = vector.shape_cast %7 : vector<8xf32> to vector<8x1xf32>
    %cst_6 = arith.constant 1.000000e-24 : f32
    %9 = vector.broadcast %cst_6 : f32 to vector<8x1xf32>
    %10 = arith.maximumf %8, %9 : vector<8x1xf32>
    %11 = math.rsqrt %10 : vector<8x1xf32>
    %12 = vector.broadcast %11 : vector<8x1xf32> to vector<8x128xf32>
    %13 = arith.mulf %5, %12 : vector<8x128xf32>
    %cst_7 = arith.constant 0.000000e+00 : f32
    %14 = vector.broadcast %cst_7 : f32 to vector<8x128xf32>
    %c0_i32_8 = arith.constant 0 : i32
    %15 = vector.broadcast %c0_i32_8 : i32 to vector<8x1xi32>
    %16 = arith.cmpi eq, %3, %15 : vector<8x1xi32>
    %17 = arith.extui %16 : vector<8x1xi1> to vector<8x1xi32>
    %18 = arith.sitofp %17 : vector<8x1xi32> to vector<8x1xf32>
    %c0_9 = arith.constant 0 : index
    %c0_10 = arith.constant 0 : index
    %c0_11 = arith.constant 0 : index
    %19 = vector.load %arg2[%c0_9, %c0_10, %c0_11] : memref<8x4x128xf32, #tpu.memory_space<vmem>>, vector<8x1x128xf32>
    %20 = vector.shape_cast %19 : vector<8x1x128xf32> to vector<8x128xf32>
    %21 = vector.broadcast %18 : vector<8x1xf32> to vector<8x128xf32>
    %22 = arith.mulf %21, %20 : vector<8x128xf32>
    %23 = arith.addf %14, %22 : vector<8x128xf32>
    %c1_i32 = arith.constant 1 : i32
    %24 = vector.broadcast %c1_i32 : i32 to vector<8x1xi32>
    %25 = arith.cmpi eq, %3, %24 : vector<8x1xi32>
    %26 = arith.extui %25 : vector<8x1xi1> to vector<8x1xi32>
    %27 = arith.sitofp %26 : vector<8x1xi32> to vector<8x1xf32>
    %c0_12 = arith.constant 0 : index
    %c1 = arith.constant 1 : index
    %c0_13 = arith.constant 0 : index
    %28 = vector.load %arg2[%c0_12, %c1, %c0_13] : memref<8x4x128xf32, #tpu.memory_space<vmem>>, vector<8x1x128xf32>
    %29 = vector.shape_cast %28 : vector<8x1x128xf32> to vector<8x128xf32>
    %30 = vector.broadcast %27 : vector<8x1xf32> to vector<8x128xf32>
    %31 = arith.mulf %30, %29 : vector<8x128xf32>
    %32 = arith.addf %23, %31 : vector<8x128xf32>
    %c2_i32 = arith.constant 2 : i32
    %33 = vector.broadcast %c2_i32 : i32 to vector<8x1xi32>
    %34 = arith.cmpi eq, %3, %33 : vector<8x1xi32>
    %35 = arith.extui %34 : vector<8x1xi1> to vector<8x1xi32>
    %36 = arith.sitofp %35 : vector<8x1xi32> to vector<8x1xf32>
    %c0_14 = arith.constant 0 : index
    %c2 = arith.constant 2 : index
    %c0_15 = arith.constant 0 : index
    %37 = vector.load %arg2[%c0_14, %c2, %c0_15] : memref<8x4x128xf32, #tpu.memory_space<vmem>>, vector<8x1x128xf32>
    %38 = vector.shape_cast %37 : vector<8x1x128xf32> to vector<8x128xf32>
    %39 = vector.broadcast %36 : vector<8x1xf32> to vector<8x128xf32>
    %40 = arith.mulf %39, %38 : vector<8x128xf32>
    %41 = arith.addf %32, %40 : vector<8x128xf32>
    %c3_i32 = arith.constant 3 : i32
    %42 = vector.broadcast %c3_i32 : i32 to vector<8x1xi32>
    %43 = arith.cmpi eq, %3, %42 : vector<8x1xi32>
    %44 = arith.extui %43 : vector<8x1xi1> to vector<8x1xi32>
    %45 = arith.sitofp %44 : vector<8x1xi32> to vector<8x1xf32>
    %c0_16 = arith.constant 0 : index
    %c3 = arith.constant 3 : index
    %c0_17 = arith.constant 0 : index
    %46 = vector.load %arg2[%c0_16, %c3, %c0_17] : memref<8x4x128xf32, #tpu.memory_space<vmem>>, vector<8x1x128xf32>
    %47 = vector.shape_cast %46 : vector<8x1x128xf32> to vector<8x128xf32>
    %48 = vector.broadcast %45 : vector<8x1xf32> to vector<8x128xf32>
    %49 = arith.mulf %48, %47 : vector<8x128xf32>
    %50 = arith.addf %41, %49 : vector<8x128xf32>
    %51 = arith.mulf %50, %50 : vector<8x128xf32>
    %cst_18 = arith.constant dense<0.000000e+00> : vector<8xf32>
    %52 = vector.multi_reduction <add>, %51, %cst_18 [1] : vector<8x128xf32> to vector<8xf32>
    %53 = vector.shape_cast %52 : vector<8xf32> to vector<8x1xf32>
    %cst_19 = arith.constant 1.000000e-24 : f32
    %54 = vector.broadcast %cst_19 : f32 to vector<8x1xf32>
    %55 = arith.maximumf %53, %54 : vector<8x1xf32>
    %56 = math.rsqrt %55 : vector<8x1xf32>
    %57 = vector.broadcast %56 : vector<8x1xf32> to vector<8x128xf32>
    %58 = arith.mulf %50, %57 : vector<8x128xf32>
    %59 = arith.truncf %58 : vector<8x128xf32> to vector<8x128xbf16>
    %60 = arith.truncf %13 : vector<8x128xf32> to vector<8x128xbf16>
    %cst_20 = arith.constant dense<0.000000e+00> : vector<8x8xf32>
    %61 = tpu.matmul %59, %60, %cst_20 {dimension_numbers = #tpu.dot_dimension_numbers<[1], [1], [0], [0], [0, 0, 1, 0], [], []>} : vector<8x128xbf16>, vector<8x128xbf16>, vector<8x8xf32> -> vector<8x8xf32>
    %cst_21 = arith.constant 1.000000e+01 : f32
    %62 = vector.broadcast %cst_21 : f32 to vector<8x8xf32>
    %63 = arith.mulf %61, %62 : vector<8x8xf32>
    %c8_i32 = arith.constant 8 : i32
    %64 = arith.muli %arg0, %c8_i32 : i32
    %65 = tpu.iota {dimensions = array<i32: 0>} : vector<8x8xi32>
    %66 = vector.broadcast %64 : i32 to vector<8x8xi32>
    %67 = arith.addi %66, %65 : vector<8x8xi32>
    %68 = tpu.iota {dimensions = array<i32: 1>} : vector<8x8xi32>
    %69 = arith.cmpi eq, %67, %68 : vector<8x8xi32>
    %cst_22 = arith.constant 0.000000e+00 : f32
    %70 = vector.broadcast %cst_22 : f32 to vector<8x8xf32>
    %71 = arith.select %69, %70, %63 : vector<8x8xi1>, vector<8x8xf32>
    %72 = vector.broadcast %3 : vector<8x1xi32> to vector<8x8xi32>
    %73 = vector.broadcast %4 : vector<1x8xi32> to vector<8x8xi32>
    %74 = arith.cmpi eq, %72, %73 : vector<8x8xi32>
    %cst_23 = arith.constant dense<true> : vector<8x8xi1>
    %75 = arith.xori %69, %cst_23 : vector<8x8xi1>
    %76 = arith.andi %74, %75 : vector<8x8xi1>
    %77 = arith.extui %76 : vector<8x8xi1> to vector<8x8xi32>
    %78 = arith.sitofp %77 : vector<8x8xi32> to vector<8x8xf32>
    %cst_24 = arith.constant dense<0xFF800000> : vector<8xf32>
    %79 = vector.multi_reduction <maximumf>, %71, %cst_24 [1] : vector<8x8xf32> to vector<8xf32>
    %80 = vector.shape_cast %79 : vector<8xf32> to vector<8x1xf32>
    %81 = vector.broadcast %80 : vector<8x1xf32> to vector<8x8xf32>
    %82 = arith.subf %71, %81 : vector<8x8xf32>
    %83 = math.exp %82 : vector<8x8xf32>
    %cst_25 = arith.constant dense<0.000000e+00> : vector<8xf32>
    %84 = vector.multi_reduction <add>, %83, %cst_25 [1] : vector<8x8xf32> to vector<8xf32>
    %85 = vector.shape_cast %84 : vector<8xf32> to vector<8x1xf32>
    %cst_26 = arith.constant 9.99999996E-13 : f32
    %86 = vector.broadcast %cst_26 : f32 to vector<8x1xf32>
    %87 = arith.addf %85, %86 : vector<8x1xf32>
    %88 = math.log %87 : vector<8x1xf32>
    %cst_27 = arith.constant dense<0.000000e+00> : vector<8xf32>
    %89 = vector.multi_reduction <add>, %78, %cst_27 [1] : vector<8x8xf32> to vector<8xf32>
    %90 = vector.shape_cast %89 : vector<8xf32> to vector<8x1xf32>
    %91 = vector.broadcast %80 : vector<8x1xf32> to vector<8x8xf32>
    %92 = arith.subf %71, %91 : vector<8x8xf32>
    %93 = arith.mulf %78, %92 : vector<8x8xf32>
    %cst_28 = arith.constant dense<0.000000e+00> : vector<8xf32>
    %94 = vector.multi_reduction <add>, %93, %cst_28 [1] : vector<8x8xf32> to vector<8xf32>
    %95 = vector.shape_cast %94 : vector<8xf32> to vector<8x1xf32>
    %96 = arith.mulf %90, %88 : vector<8x1xf32>
    %97 = arith.subf %95, %96 : vector<8x1xf32>
    %cst_29 = arith.constant 0.000000e+00 : f32
    %98 = vector.broadcast %cst_29 : f32 to vector<8x1xf32>
    %99 = arith.cmpf oeq, %90, %98 : vector<8x1xf32>
    %cst_30 = arith.constant 1.000000e+00 : f32
    %100 = vector.broadcast %cst_30 : f32 to vector<8x1xf32>
    %101 = arith.select %99, %100, %90 : vector<8x1xi1>, vector<8x1xf32>
    %102 = arith.divf %97, %101 : vector<8x1xf32>
    %c0_31 = arith.constant 0 : index
    %103 = memref.load %arg11[%c0_31] : memref<2xf32, #tpu.memory_space<smem>>
    %104 = vector.shape_cast %102 : vector<8x1xf32> to vector<1x8x1xf32>
    %cst_32 = arith.constant dense<0.000000e+00> : vector<1xf32>
    %105 = vector.multi_reduction <add>, %104, %cst_32 [1, 2] : vector<1x8x1xf32> to vector<1xf32>
    %106 = vector.shape_cast %105 : vector<1xf32> to vector<1x1x1xf32>
    %107 = vector.extract %106[0, 0, 0] : f32 from vector<1x1x1xf32>
    %108 = arith.addf %103, %107 : f32
    %c0_33 = arith.constant 0 : index
    %109 = memref.load %arg11[%c0_33] : memref<2xf32, #tpu.memory_space<smem>>
    memref.store %108, %arg11[%c0_33] : memref<2xf32, #tpu.memory_space<smem>>
    %cst_34 = arith.constant dense<0xFF800000> : vector<8xf32>
    %110 = vector.multi_reduction <maximumf>, %71, %cst_34 [0] : vector<8x8xf32> to vector<8xf32>
    %111 = vector.shape_cast %110 : vector<8xf32> to vector<1x8xf32>
    %c0_35 = arith.constant 0 : index
    %c0_36 = arith.constant 0 : index
    %112 = vector.load %arg7[%c0_35, %c0_36] : memref<1x8xf32, #tpu.memory_space<vmem>>, vector<1x8xf32>
    %113 = arith.maximumf %112, %111 : vector<1x8xf32>
    %c0_37 = arith.constant 0 : index
    %c0_38 = arith.constant 0 : index
    %114 = vector.load %arg8[%c0_37, %c0_38] : memref<1x8xf32, #tpu.memory_space<vmem>>, vector<1x8xf32>
    %c0_39 = arith.constant 0 : index
    %c0_40 = arith.constant 0 : index
    %115 = vector.load %arg7[%c0_39, %c0_40] : memref<1x8xf32, #tpu.memory_space<vmem>>, vector<1x8xf32>
    %116 = arith.subf %115, %113 : vector<1x8xf32>
    %117 = math.exp %116 : vector<1x8xf32>
    %118 = arith.mulf %114, %117 : vector<1x8xf32>
    %119 = vector.broadcast %113 : vector<1x8xf32> to vector<8x8xf32>
    %120 = arith.subf %71, %119 : vector<8x8xf32>
    %121 = math.exp %120 : vector<8x8xf32>
    %cst_41 = arith.constant dense<0.000000e+00> : vector<8xf32>
    %122 = vector.multi_reduction <add>, %121, %cst_41 [0] : vector<8x8xf32> to vector<8xf32>
    %123 = vector.shape_cast %122 : vector<8xf32> to vector<1x8xf32>
    %124 = arith.addf %118, %123 : vector<1x8xf32>
    %c0_42 = arith.constant 0 : index
    %c0_43 = arith.constant 0 : index
    %125 = vector.load %arg8[%c0_42, %c0_43] : memref<1x8xf32, #tpu.memory_space<vmem>>, vector<1x8xf32>
    tpu.vector_store %arg8[%c0_42, %c0_43], %124 {strides = array<i32>} : memref<1x8xf32, #tpu.memory_space<vmem>>, vector<1x8xf32>,
    %c0_44 = arith.constant 0 : index
    %c0_45 = arith.constant 0 : index
    %126 = vector.load %arg7[%c0_44, %c0_45] : memref<1x8xf32, #tpu.memory_space<vmem>>, vector<1x8xf32>
    tpu.vector_store %arg7[%c0_44, %c0_45], %113 {strides = array<i32>} : memref<1x8xf32, #tpu.memory_space<vmem>>, vector<1x8xf32>,
    %c0_46 = arith.constant 0 : index
    %c0_47 = arith.constant 0 : index
    %127 = vector.load %arg9[%c0_46, %c0_47] : memref<1x8xf32, #tpu.memory_space<vmem>>, vector<1x8xf32>
    %128 = arith.mulf %78, %71 : vector<8x8xf32>
    %cst_48 = arith.constant dense<0.000000e+00> : vector<8xf32>
    %129 = vector.multi_reduction <add>, %128, %cst_48 [0] : vector<8x8xf32> to vector<8xf32>
    %130 = vector.shape_cast %129 : vector<8xf32> to vector<1x8xf32>
    %131 = arith.addf %127, %130 : vector<1x8xf32>
    %c0_49 = arith.constant 0 : index
    %c0_50 = arith.constant 0 : index
    %132 = vector.load %arg9[%c0_49, %c0_50] : memref<1x8xf32, #tpu.memory_space<vmem>>, vector<1x8xf32>
    tpu.vector_store %arg9[%c0_49, %c0_50], %131 {strides = array<i32>} : memref<1x8xf32, #tpu.memory_space<vmem>>, vector<1x8xf32>,
    %c0_51 = arith.constant 0 : index
    %c0_52 = arith.constant 0 : index
    %133 = vector.load %arg10[%c0_51, %c0_52] : memref<1x8xf32, #tpu.memory_space<vmem>>, vector<1x8xf32>
    %cst_53 = arith.constant dense<0.000000e+00> : vector<8xf32>
    %134 = vector.multi_reduction <add>, %78, %cst_53 [0] : vector<8x8xf32> to vector<8xf32>
    %135 = vector.shape_cast %134 : vector<8xf32> to vector<1x8xf32>
    %136 = arith.addf %133, %135 : vector<1x8xf32>
    %c0_54 = arith.constant 0 : index
    %c0_55 = arith.constant 0 : index
    %137 = vector.load %arg10[%c0_54, %c0_55] : memref<1x8xf32, #tpu.memory_space<vmem>>, vector<1x8xf32>
    tpu.vector_store %arg10[%c0_54, %c0_55], %136 {strides = array<i32>} : memref<1x8xf32, #tpu.memory_space<vmem>>, vector<1x8xf32>,
    %c0_56 = arith.constant 0 : index
    %c0_57 = arith.constant 0 : index
    %138 = vector.load %arg3[%c0_56, %c0_57] : memref<8x4xf32, #tpu.memory_space<vmem>>, vector<8x4xf32>
    %139 = tpu.iota {dimensions = array<i32: 1>} : vector<8x4xi32>
    %140 = vector.broadcast %3 : vector<8x1xi32> to vector<8x4xi32>
    %141 = arith.cmpi eq, %139, %140 : vector<8x4xi32>
    %142 = arith.extui %141 : vector<8x4xi1> to vector<8x4xi32>
    %143 = arith.sitofp %142 : vector<8x4xi32> to vector<8x4xf32>
    %cst_58 = arith.constant dense<0xFF800000> : vector<8xf32>
    %144 = vector.multi_reduction <maximumf>, %138, %cst_58 [1] : vector<8x4xf32> to vector<8xf32>
    %145 = vector.shape_cast %144 : vector<8xf32> to vector<8x1xf32>
    %146 = vector.broadcast %145 : vector<8x1xf32> to vector<8x4xf32>
    %147 = arith.subf %138, %146 : vector<8x4xf32>
    %148 = math.exp %147 : vector<8x4xf32>
    %cst_59 = arith.constant dense<0.000000e+00> : vector<8xf32>
    %149 = vector.multi_reduction <add>, %148, %cst_59 [1] : vector<8x4xf32> to vector<8xf32>
    %150 = vector.shape_cast %149 : vector<8xf32> to vector<8x1xf32>
    %151 = math.log %150 : vector<8x1xf32>
    %152 = arith.addf %151, %145 : vector<8x1xf32>
    %153 = arith.mulf %138, %143 : vector<8x4xf32>
    %cst_60 = arith.constant dense<0.000000e+00> : vector<8xf32>
    %154 = vector.multi_reduction <add>, %153, %cst_60 [1] : vector<8x4xf32> to vector<8xf32>
    %155 = vector.shape_cast %154 : vector<8xf32> to vector<8x1xf32>
    %c1_61 = arith.constant 1 : index
    %156 = memref.load %arg11[%c1_61] : memref<2xf32, #tpu.memory_space<smem>>
    %157 = arith.subf %152, %155 : vector<8x1xf32>
    %158 = vector.shape_cast %157 : vector<8x1xf32> to vector<1x8x1xf32>
    %cst_62 = arith.constant dense<0.000000e+00> : vector<1xf32>
    %159 = vector.multi_reduction <add>, %158, %cst_62 [1, 2] : vector<1x8x1xf32> to vector<1xf32>
    %160 = vector.shape_cast %159 : vector<1xf32> to vector<1x1x1xf32>
    %161 = vector.extract %160[0, 0, 0] : f32 from vector<1x1x1xf32>
    %162 = arith.addf %156, %161 : f32
    %c1_63 = arith.constant 1 : index
    %163 = memref.load %arg11[%c1_63] : memref<2xf32, #tpu.memory_space<smem>>
    memref.store %162, %arg11[%c1_63] : memref<2xf32, #tpu.memory_space<smem>>
    %c0_i32_64 = arith.constant 0 : i32
    %164 = arith.cmpi eq, %arg0, %c0_i32_64 : i32
    %165 = arith.extui %164 : i1 to i32
    %c0_i32_65 = arith.constant 0 : i32
    %166 = arith.cmpi ne, %165, %c0_i32_65 : i32
    scf.if %166 {
      %c0_66 = arith.constant 0 : index
      %c0_67 = arith.constant 0 : index
      %167 = vector.load %arg10[%c0_66, %c0_67] : memref<1x8xf32, #tpu.memory_space<vmem>>, vector<1x8xf32>
      %c0_68 = arith.constant 0 : index
      %c0_69 = arith.constant 0 : index
      %168 = vector.load %arg8[%c0_68, %c0_69] : memref<1x8xf32, #tpu.memory_space<vmem>>, vector<1x8xf32>
      %cst_70 = arith.constant 9.99999996E-13 : f32
      %169 = vector.broadcast %cst_70 : f32 to vector<1x8xf32>
      %170 = arith.addf %168, %169 : vector<1x8xf32>
      %171 = math.log %170 : vector<1x8xf32>
      %c0_71 = arith.constant 0 : index
      %c0_72 = arith.constant 0 : index
      %172 = vector.load %arg9[%c0_71, %c0_72] : memref<1x8xf32, #tpu.memory_space<vmem>>, vector<1x8xf32>
      %c0_73 = arith.constant 0 : index
      %c0_74 = arith.constant 0 : index
      %173 = vector.load %arg7[%c0_73, %c0_74] : memref<1x8xf32, #tpu.memory_space<vmem>>, vector<1x8xf32>
      %174 = arith.addf %173, %171 : vector<1x8xf32>
      %175 = arith.mulf %167, %174 : vector<1x8xf32>
      %176 = arith.subf %172, %175 : vector<1x8xf32>
      %cst_75 = arith.constant 0.000000e+00 : f32
      %177 = vector.broadcast %cst_75 : f32 to vector<1x8xf32>
      %178 = arith.cmpf oeq, %167, %177 : vector<1x8xf32>
      %cst_76 = arith.constant 1.000000e+00 : f32
      %179 = vector.broadcast %cst_76 : f32 to vector<1x8xf32>
      %180 = arith.select %178, %179, %167 : vector<1x8xi1>, vector<1x8xf32>
      %181 = arith.divf %176, %180 : vector<1x8xf32>
      %c0_77 = arith.constant 0 : index
      %182 = memref.load %arg11[%c0_77] : memref<2xf32, #tpu.memory_space<smem>>
      %183 = vector.shape_cast %181 : vector<1x8xf32> to vector<1x1x8xf32>
      %cst_78 = arith.constant dense<0.000000e+00> : vector<1xf32>
      %184 = vector.multi_reduction <add>, %183, %cst_78 [1, 2] : vector<1x1x8xf32> to vector<1xf32>
      %185 = vector.shape_cast %184 : vector<1xf32> to vector<1x1x1xf32>
      %186 = vector.extract %185[0, 0, 0] : f32 from vector<1x1x1xf32>
      %187 = arith.addf %182, %186 : f32
      %c1_79 = arith.constant 1 : index
      %188 = memref.load %arg11[%c1_79] : memref<2xf32, #tpu.memory_space<smem>>
      %cst_80 = arith.constant 5.000000e-01 : f32
      %189 = arith.mulf %cst_80, %188 : f32
      %cst_81 = arith.constant 1.250000e-01 : f32
      %190 = arith.mulf %189, %cst_81 : f32
      %cst_82 = arith.constant 3.125000e-02 : f32
      %191 = arith.mulf %cst_82, %187 : f32
      %192 = arith.subf %190, %191 : f32
      %c0_83 = arith.constant 0 : index
      %193 = memref.load %arg6[%c0_83] : memref<1xf32, #tpu.memory_space<smem>>
      memref.store %192, %arg6[%c0_83] : memref<1xf32, #tpu.memory_space<smem>>
    } else {
    }
    return
  }
  func.func @transform_0(%arg0: i32) -> (i32, i32) {
    %c0_i32 = arith.constant 0 : i32
    %c0_i32_0 = arith.constant 0 : i32
    %c0_i32_1 = arith.constant 0 : i32
    return %c0_i32, %c0_i32_0 : i32, i32
  }
  func.func @transform_1(%arg0: i32) -> (i32, i32, i32) {
    %c0_i32 = arith.constant 0 : i32
    %c0_i32_0 = arith.constant 0 : i32
    %c0_i32_1 = arith.constant 0 : i32
    return %arg0, %c0_i32, %c0_i32_0 : i32, i32, i32
  }
  func.func @transform_2(%arg0: i32) -> (i32, i32) {
    %c0_i32 = arith.constant 0 : i32
    %c0_i32_0 = arith.constant 0 : i32
    return %arg0, %c0_i32 : i32, i32
  }
  func.func @transform_3(%arg0: i32) -> (i32, i32) {
    %c0_i32 = arith.constant 0 : i32
    %c0_i32_0 = arith.constant 0 : i32
    return %arg0, %c0_i32 : i32, i32
  }
  func.func @transform_4(%arg0: i32) -> (i32, i32) {
    %c0_i32 = arith.constant 0 : i32
    %c0_i32_0 = arith.constant 0 : i32
    %c0_i32_1 = arith.constant 0 : i32
    return %c0_i32, %c0_i32_0 : i32, i32
  }
  func.func @transform_5(%arg0: i32) -> i32 {
    %c0_i32 = arith.constant 0 : i32
    %c0_i32_0 = arith.constant 0 : i32
    return %c0_i32 : i32
  }
}

</mosaic_0001>

<bundles_post_ra>
// kernel: dual_loss_pallas.1
= control target key start
LH: loop header
LB: loop body
LE: loop exit
PB: predicated region body
PF: predicated region fallthrough
CT: control target
= control target key end

     0   :  { %v534_v1 = vmov 0   ;;  %v535_v2 = vmov 0.0   ;;  %s772_s0 = inlined_call_operand.vmem [shape: f32[8,128], index: 0, kind: input, shape index: {}]   ;;  %s773_s1 = inlined_call_operand.vmem [shape: f32[8,4,128], index: 1, kind: input, shape index: {}]   ;;  %s774_s2 = inlined_call_operand.vmem [shape: f32[8,4], index: 2, kind: input, shape index: {}]   ;;  %s775_s3 = inlined_call_operand.vmem [shape: s32[8,1], index: 3, kind: input, shape index: {}]   ;;  %s776_s4 = inlined_call_operand.vmem [shape: s32[1,8], index: 4, kind: input, shape index: {}]   ;;  %s777_s5 = inlined_call_operand.hbm [shape: f32[1], index: 5, kind: output, shape index: {}]  }
   0x1   :  { %v573_v0 = vld [vmem:[%s775_s3] sm:$0xff]  ;;  %493 = vset.pattern.permute.xlu0 %v534_v1  ;;  %499 = vset.pattern.permute.xlu1 %v534_v1 }
   0x2   :  { %vm44_vm0 = vcmp.eq.s32.totalorder %v573_v0, 0  ;;  %vm92_vm1 = vcmp.eq.s32.totalorder %v573_v0, 1  ;;  %vm174_vm2 = vcmp.eq.s32.totalorder %v573_v0, 3  ;;  %475 = vmatprep.subr.bf16.mxu0 %v535_v2  ;;  %vm133_vm3 = vcmp.eq.s32.totalorder %v573_v0, 2 }
   0x3   :  { %v464_v3 = vsel %vm44_vm0, 1.0, %v535_v2  ;;  %v465_v4 = vsel %vm92_vm1, 1.0, %v535_v2  ;;  %v467_v5 = vsel %vm174_vm2, 1.0, %v535_v2  ;;  %v466_v7 = vsel %vm133_vm3, 1.0, %v535_v2 }
   0x4   :  { %v494_v6 = vpack.i.bf16 %v465_v4, %v464_v3  ;;  %187 = vperm.xlu1 %499, %v467_v5  }
   0x6   :  { %495 = vperm.xlu0 %493, %v494_v6  }
   0xa   :  { %146 = vperm.xlu0 %493, %v466_v7  }
   0xb   :  { %10 = vsyncpa [#allocation8], 0  ;;  %v587_v8 = vld [vmem:[%s772_s0] sm:$0xff]  ;;  %vm69_vm4 = vcmask 1041409   ;;  %v49_v15 = vld [vmem:[%s773_s1 + $0x8] sm:$0x1] }
   0xc   :  { %v38_v9 = vmul.f32 %v587_v8, %v587_v8  ;;  %v48_v10 = vld [vmem:[%s773_s1 + $0x4] sm:$0x1]  ;;  %v96_v11 = vld [vmem:[%s773_s1 + $0x5] sm:$0x1]  ;;  %v47_v12 = vld [vmem:[%s773_s1] sm:$0x1] }
   0xd   :  { %v137_v13 = vld [vmem:[%s773_s1 + $0x6] sm:$0x1]  ;;  %v178_v14 = vld [vmem:[%s773_s1 + $0x7] sm:$0x1]  ;;  %v68_v16 = vrot.slane %v48_v10, 7  ;;  %v116_v18 = vrot.slane %v96_v11, 7 }
   0xe   :  { %v97_v17 = vld [vmem:[%s773_s1 + $0x9] sm:$0x1]  ;;  %v50_v19 = vld [vmem:[%s773_s1 + $0xc] sm:$0x1]  ;;  %v95_v20 = vld [vmem:[%s773_s1 + $0x1] sm:$0x1] }
   0xf   :  { %v98_v21 = vld [vmem:[%s773_s1 + $0xd] sm:$0x1]  ;;  %v138_v22 = vld [vmem:[%s773_s1 + $0xa] sm:$0x1]  ;;  %v157_v23 = vrot.slane %v137_v13, 7  ;;  %v198_v25 = vrot.slane %v178_v14, 7  ;;  %v70_v30 = vsel %vm69_vm4, %v68_v16, %v47_v12  ;;  %v117_v31 = vsel %vm69_vm4, %v116_v18, %v95_v20 }
  0x10   :  { %v179_v24 = vld [vmem:[%s773_s1 + $0xb] sm:$0x1]  ;;  %v71_v26 = vrot.slane %v49_v15, 6  ;;  %v118_v27 = vrot.slane %v97_v17, 6  ;;  %v136_v28 = vld [vmem:[%s773_s1 + $0x2] sm:$0x1] }
  0x11   :  { %v177_v29 = vld [vmem:[%s773_s1 + $0x3] sm:$0x1]  ;;  %vm72_vm5 = vcmask 1042434   ;;  %v139_v32 = vld [vmem:[%s773_s1 + $0xe] sm:$0x1]  ;;  %v159_v33 = vrot.slane %v138_v22, 6  ;;  %v158_v40 = vsel %vm69_vm4, %v157_v23, %v136_v28 }
  0x12   :  { %v180_v34 = vld [vmem:[%s773_s1 + $0xf] sm:$0x1]  ;;  %v200_v35 = vrot.slane %v179_v24, 6  ;;  %v51_v36 = vld [vmem:[%s773_s1 + $0x10] sm:$0x1]  ;;  %v74_v37 = vrot.slane %v50_v19, 5  ;;  %v199_v41 = vsel %vm69_vm4, %v198_v25, %v177_v29  ;;  %v73_v42 = vsel %vm72_vm5, %v71_v26, %v70_v30 }
  0x13   :  { %v99_v38 = vld [vmem:[%s773_s1 + $0x11] sm:$0x1]  ;;  %v120_v39 = vrot.slane %v98_v21, 5  ;;  %vm75_vm6 = vcmask 1043459   ;;  %v119_v43 = vsel %vm72_vm5, %v118_v27, %v117_v31  ;;  %v140_v44 = vld [vmem:[%s773_s1 + $0x12] sm:$0x1]  ;;  %v160_v52 = vsel %vm72_vm5, %v159_v33, %v158_v40 }
  0x14   :  { %v161_v45 = vrot.slane %v139_v32, 5  ;;  %v181_v46 = vld [vmem:[%s773_s1 + $0x13] sm:$0x1]  ;;  %v202_v47 = vrot.slane %v180_v34, 5  ;;  %v52_v48 = vld [vmem:[%s773_s1 + $0x14] sm:$0x1]  ;;  %v201_v53 = vsel %vm72_vm5, %v200_v35, %v199_v41  ;;  %v76_v54 = vsel %vm75_vm6, %v74_v37, %v73_v42 }
  0x15   :  { %v77_v49 = vrot.slane %v51_v36, 4  ;;  %v100_v50 = vld [vmem:[%s773_s1 + $0x15] sm:$0x1]  ;;  %v122_v51 = vrot.slane %v99_v38, 4  ;;  %vm78_vm7 = vcmask 1044484   ;;  %v121_v55 = vsel %vm75_vm6, %v120_v39, %v119_v43  ;;  %s522_s16 = scalar_lea.hbm %s777_s5, 16 }
  0x16   :  { %v141_v56 = vld [vmem:[%s773_s1 + $0x16] sm:$0x1]  ;;  %v163_v57 = vrot.slane %v140_v44, 4  ;;  %v182_v58 = vld [vmem:[%s773_s1 + $0x17] sm:$0x1]  ;;  %v204_v59 = vrot.slane %v181_v46, 4  ;;  %v162_v1 = vsel %vm75_vm6, %v161_v45, %v160_v52  ;;  %v203_v3 = vsel %vm75_vm6, %v202_v47, %v201_v53  ;;  %p523_p0 = scmp.ne.s32.totalorder %s777_s5, %s522_s16  ;;  %p526_p1 = scmp.lt.u32.totalorder %s522_s16, %s777_s5 }
  0x17   :  { %v53_v60 = vld [vmem:[%s773_s1 + $0x18] sm:$0x1]  ;;  %v80_v61 = vrot.slane %v52_v48, 3  ;;  %v101_v62 = vld [vmem:[%s773_s1 + $0x19] sm:$0x1]  ;;  %v124_v63 = vrot.slane %v100_v50, 3  ;;  %v79_v4 = vsel %vm78_vm7, %v77_v49, %v76_v54  ;;  %v123_v5 = vsel %vm78_vm7, %v122_v51, %v121_v55 }
  0x18   :  { %vm81_vm8 = vcmask 1045509   ;;  %v142_v6 = vld [vmem:[%s773_s1 + $0x1a] sm:$0x1]  ;;  %v165_v7 = vrot.slane %v141_v56, 3  ;;  %v206_v10 = vrot.slane %v182_v58, 3  ;;  %v83_v12 = vrot.slane %v53_v60, 2  ;;  %p528_p2 = pnand %p526_p1, %p523_p0 }
  0x19   :  { %v54_v11 = vld [vmem:[%s773_s1 + $0x1c] sm:$0x1]  ;;  %v102_v13 = vld [vmem:[%s773_s1 + $0x1d] sm:$0x1]  ;;  %v126_v14 = vrot.slane %v101_v62, 2  ;;  %v164_v15 = vsel %vm78_vm7, %v163_v57, %v162_v1  ;;  %v205_v16 = vsel %vm78_vm7, %v204_v59, %v203_v3  ;;  %v82_v17 = vsel %vm81_vm8, %v80_v61, %v79_v4 }
  0x1a   :  { %vm84_vm9 = vcmask 1046534   ;;  %v125_v18 = vsel %vm81_vm8, %v124_v63, %v123_v5  ;;  %v143_v19 = vld [vmem:[%s773_s1 + $0x1e] sm:$0x1]  ;;  %v167_v20 = vrot.slane %v142_v6, 2  ;;  %v184_v21 = vld [vmem:[%s773_s1 + $0x1f] sm:$0x1]  ;;  %v166_v25 = vsel %vm81_vm8, %v165_v7, %v164_v15 }
  0x1b   :  { %v86_v23 = vrot.slane %v54_v11, 1  ;;  %v128_v24 = vrot.slane %v102_v13, 1  ;;  %v207_v26 = vsel %vm81_vm8, %v206_v10, %v205_v16  ;;  %v85_v27 = vsel %vm84_vm9, %v83_v12, %v82_v17 }
  0x1c   :  { %vm87_vm10 = vcmask 1047559   ;;  %v127_v28 = vsel %vm84_vm9, %v126_v14, %v125_v18  ;;  %v169_v29 = vrot.slane %v143_v19, 1  ;;  %v210_v30 = vrot.slane %v184_v21, 1 }
  0x1d   :  { %v168_v31 = vsel %vm84_vm9, %v167_v20, %v166_v25  ;;  %v88_v33 = vsel %vm87_vm10, %v86_v23, %v85_v27  ;;  %v129_v34 = vsel %vm87_vm10, %v128_v24, %v127_v28  ;;  %vm536_vm11 = vmmov 0  }
  0x1e   :  { %v170_v38 = vsel %vm87_vm10, %v169_v29, %v168_v31  ;;  %477 = vmatprep.mubr.msk.bf16.mxu0 %vm536_vm11, %v535_v2  ;;  %vm26_vm12 = vcmask 57344   ;;  %v537_v60 = vmov -inf   ;;  %vm383_vm13 = vcmask 31744  }
  0x1f   :  { %27 = vst.msk [vmem:[#allocation2] sm:$0x1] %vm26_vm12, %v537_v60  ;;  %28 = vst.msk [vmem:[#allocation3] sm:$0x1] %vm26_vm12, %v535_v2  ;;  %v265_v62 = vlaneseq  ;;  %vm285_vm15 = vcmask 64512   ;;  %vm538_vm0 = vmmov 1  }
  0x20   :  { %29 = vst.msk [vmem:[#allocation4] sm:$0x1] %vm26_vm12, %v535_v2  ;;  %30 = vst.msk [vmem:[#allocation5] sm:$0x1] %vm26_vm12, %v535_v2  ;;  %vm312_vm7 = vcmask 7168  }
  0x21   :  { %v266_v63 = vshrl.u32 %v265_v62, 7  ;;  %v727_v1 = vand.u32 127, %v265_v62 }
  0x23   :  { %vm271_vm14 = vcmp.eq.s32.totalorder %v266_v63, %v727_v1  ;;  %v342_v17 = vsub.s32 0, %v266_v63 }
  0x24   :  { %vm281_vm1 = vmxor %vm271_vm14, %vm538_vm0 }
  0x26   :  { %v332_v16 = vld [vmem:[#allocation2] sm:$0x1] }
  0x28   :  { %39 = vadd.xlane.f32.xlu1 %v38_v9  ;;  %v183_v9 = vld [vmem:[%s773_s1 + $0x1b] sm:$0x1] }
  0x29   :  { %v208_v22 = vrot.slane %v183_v9, 2 }
  0x2b   :  { %v209_v32 = vsel %vm84_vm9, %v208_v22, %v207_v26 }
  0x2c   :  { %v211_v39 = vsel %vm87_vm10, %v210_v30, %v209_v32  ;;  %v334_v32 = vld [vmem:[#allocation3] sm:$0x1] }
  0x83   :  { %v188_v40 = vpop.permute.xlu1 %187 }
  0x84   :  { %v213_v46 = vmul.f32 %v211_v39, %v188_v40 }
  0x85   :  { %v496_v35 = vpop.permute.xlu0 %495 }
  0x86   :  { %v498_v36 = vunpack.i.h.bf16 %v496_v35  ;;  %v497_v37 = vunpack.i.l.bf16 %v496_v35 }
  0x88   :  { %v131_v41 = vmul.f32 %v498_v36, %v129_v34  ;;  %v90_v42 = vmul.f32 %v497_v37, %v88_v33 }
  0x89   :  { %v147_v43 = vpop.permute.xlu0 %146 }
  0x8a   :  { %v132_v44 = vadd.f32 %v131_v41, %v90_v42  ;;  %v172_v45 = vmul.f32 %v170_v38, %v147_v43  ;;  %v468_v42 = vld [vmem:[%s776_s4] ss:$0 sm:$0xff] }
  0x8c   :  { %v173_v47 = vadd.f32 %v172_v45, %v132_v44 }
  0x8e   :  { %v214_v48 = vadd.f32 %v213_v46, %v173_v47 }
  0x90   :  { %v215_v49 = vmul.f32 %v214_v48, %v214_v48 }
  0x92   :  { %216 = vadd.xlane.f32.xlu0 %v215_v49 }
  0xb5   :  { %v40_v50 = vpop.xlane.xlu1 %39 }
  0xb6   :  { %v41_v51 = vmax.f32 %v40_v50, 1e-24 }
  0xb8   :  { %500 = vrsqrt.f32 %v41_v51 }
  0xc2   :  { %v501_v52 = vpop.eup %500 }
  0xc3   :  { %v43_v53 = vmul.f32 %v501_v52, %v587_v8  ;;  %v723_v8 = vld [vmem:[%s774_s2] sm:$0xff] }
  0xc4   :  { %v384_v61 = vsel %vm383_vm13, %v723_v8, -inf }
  0xc5   :  { %v222_v54 = vpack.c.bf16 %v43_v53, %v43_v53  ;;  %385 = vmax.xlane.f32.xlu1 %v384_v61  ;;  %v370_v61 = vld [vmem:[#allocation5] sm:$0x1] }
  0xc7   :  { %476 = vmatpush3.bf16.xpose.msra.mxu0 %v222_v54 }
 0x11f   :  { %v217_v55 = vpop.xlane.xlu0 %216 }
 0x120   :  { %v218_v56 = vmax.f32 %v217_v55, 1e-24 }
 0x122   :  { %502 = vrsqrt.f32 %v218_v56 }
 0x12c   :  { %v503_v57 = vpop.eup %502 }
 0x12d   :  { %v220_v58 = vmul.f32 %v503_v57, %v214_v48 }
 0x12f   :  { %v221_v59 = vpack.c.bf16 %v220_v58, %v220_v58 }
 0x131   :  { %478 = vmatmul.mubr.bf16.vlgmr.msra.gmra.mrb[0].mxu0 %v221_v59 }
 0x152   :  { %v737_v37 = vpop.xlane.xlu1 %385 }
 0x204   :  { %v257_v3 = vpop.f32.mrb[0].mxu0 }
 0x205   :  { %v263_v4 = vmul.f32 10.0, %v257_v3  ;;  %v479_v5 = vpop.f32.mrb[1].mxu0  ;;  %v359_v3 = vld [vmem:[#allocation4] sm:$0x1] }
 0x206   :  { %v260_v6 = vpop.f32.mrb[2].mxu0 }
 0x207   :  { %v272_v7 = vsel %vm271_vm14, 0.0, %v263_v4  ;;  %v480_v9 = vpop.f32.mrb[3].mxu0 }
 0x208   :  { %v286_v10 = vsel %vm285_vm15, %v272_v7, -inf }
 0x209   :  { %287 = vmax.xlane.f32.xlu0 %v286_v10  ;;  %v326_v11 = vrot.slane %v286_v10, 4 }
 0x20b   :  { %v327_v12 = vmax.f32 %v286_v10, %v326_v11 }
 0x20d   :  { %v328_v13 = vrot.slane %v327_v12, 2 }
 0x20f   :  { %v329_v14 = vmax.f32 %v327_v12, %v328_v13 }
 0x211   :  { %v330_v15 = vrot.slane %v329_v14, 1 }
 0x213   :  { %v331_v18 = vmax.f32 %v329_v14, %v330_v15 }
 0x215   :  { %v333_v19 = vmax.f32 %v332_v16, %v331_v18 }
 0x217   :  { %v343_v20 = vrot.slane %v333_v19, %v342_v17  ;;  %358 = vst.msk [vmem:[#allocation2] sm:$0x1] %vm26_vm12, %v333_v19  ;;  %v335_v23 = vsub.f32 %v332_v16, %v333_v19 }
 0x219   :  { %v345_v21 = vsub.f32 %v272_v7, %v343_v20  ;;  %v336_v24 = vmul.f32 1.442695, %v335_v23 }
 0x21b   :  { %v346_v22 = vmul.f32 1.442695, %v345_v21 }
 0x21d   :  { %504 = vpow2.f32 %v346_v22 }
 0x21e   :  { %506 = vpow2.f32 %v336_v24 }
 0x21f   :  { %274 = vperm.xlu0 %493, %v573_v0   ;;  %v387_v0 = vsub.f32 %v723_v8, %v737_v37 }
 0x221   :  { %v388_v39 = vmul.f32 1.442695, %v387_v0 }
 0x223   :  { %508 = vpow2.f32 %v388_v39 }
 0x227   :  { %v505_v25 = vpop.eup %504 }
 0x228   :  { %v348_v26 = vsel %vm285_vm15, %v505_v25, 0.0  ;;  %v507_v31 = vpop.eup %506  ;;  %v424_v25 = vld [vmem:[#allocation2] sm:$0x1] }
 0x229   :  { %v349_v27 = vrot.slane %v348_v26, 4  ;;  %v338_v34 = vmul.f32 %v507_v31, %v334_v32 }
 0x22b   :  { %v350_v28 = vadd.f32 %v349_v27, %v348_v26 }
 0x22d   :  { %v351_v29 = vrot.slane %v350_v28, 2  ;;  %v509_v48 = vpop.eup %508 }
 0x22e   :  { %v390_v56 = vsel %vm383_vm13, %v509_v48, 0.0 }
 0x22f   :  { %v352_v30 = vadd.f32 %v351_v29, %v350_v28 }
 0x231   :  { %v353_v33 = vrot.slane %v352_v30, 1 }
 0x233   :  { %v354_v35 = vadd.f32 %v353_v33, %v352_v30 }
 0x235   :  { %v355_v36 = vadd.f32 %v354_v35, %v338_v34 }
 0x237   :  { %357 = vst.msk [vmem:[#allocation3] sm:$0x1] %vm26_vm12, %v355_v36 }
 0x23e   :  { %v419_v12 = vld [vmem:[#allocation3] sm:$0x1] }
 0x23f   :  { %v420_v13 = vadd.f32 1e-12, %v419_v12 }
 0x296   :  { %v288_v38 = vpop.xlane.xlu0 %287 }
 0x297   :  { %v289_v40 = vsub.f32 %v272_v7, %v288_v38 }
 0x299   :  { %v290_v41 = vmul.f32 1.442695, %v289_v40 }
 0x29b   :  { %510 = vpow2.f32 %v290_v41 }
 0x29c   :  { %512 = vlog2.f32 %v420_v13 }
 0x29e   :  { %v275_v43 = vpop.permute.xlu0 %274 }
 0x29f   :  { %vm280_vm2 = vcmp.eq.s32.totalorder %v275_v43, %v468_v42  ;;  %vm380_vm4 = vcmp.eq.s32.totalorder %v727_v1, %v275_v43 }
 0x2a0   :  { %vm282_vm3 = vmand %vm280_vm2, %vm281_vm1  ;;  %v470_v6 = vsel %vm380_vm4, 1.0, %v535_v2 }
 0x2a1   :  { %v469_v44 = vsel %vm282_vm3, 1.0, %v535_v2  ;;  %v396_v11 = vmul.f32 %v470_v6, %v723_v8 }
 0x2a2   :  { %v360_v45 = vmul.f32 %v469_v44, %v272_v7  ;;  %v298_v46 = vsel %vm285_vm15, %v469_v44, 0.0  ;;  %v301_v4 = vmul.f32 %v469_v44, %v289_v40 }
 0x2a3   :  { %v371_v47 = vrot.slane %v298_v46, 4  ;;  %v397_v1 = vsel %vm383_vm13, %v396_v11, 0.0 }
 0x2a4   :  { %v361_v49 = vsel %vm285_vm15, %v360_v45, 0.0  ;;  %v302_v10 = vsel %vm285_vm15, %v301_v4, 0.0 }
 0x2a5   :  { %v511_v50 = vpop.eup %510  ;;  %v362_v51 = vrot.slane %v361_v49, 4  ;;  %v372_v52 = vadd.f32 %v371_v47, %v298_v46 }
 0x2a6   :  { %v292_v53 = vsel %vm285_vm15, %v511_v50, 0.0  ;;  %v513_v19 = vpop.eup %512 }
 0x2a7   :  { %v363_v54 = vadd.f32 %v362_v51, %v361_v49  ;;  %293 = vadd.xlane.f32.xlu1 %v292_v53  ;;  %v373_v55 = vrot.slane %v372_v52, 2  ;;  %v422_v20 = vmul.f32 0.6931472, %v513_v19 }
 0x2a9   :  { %v364_v57 = vrot.slane %v363_v54, 2  ;;  %v374_v58 = vadd.f32 %v373_v55, %v372_v52  ;;  %v425_v28 = vadd.f32 %v424_v25, %v422_v20 }
 0x2ab   :  { %v365_v59 = vadd.f32 %v364_v57, %v363_v54  ;;  %391 = vadd.xlane.f32.xlu1 %v390_v56  ;;  %v375_v60 = vrot.slane %v374_v58, 1 }
 0x2ad   :  { %v366_v62 = vrot.slane %v365_v59, 1  ;;  %v376_v63 = vadd.f32 %v375_v60, %v374_v58 }
 0x2af   :  { %v367_v5 = vadd.f32 %v366_v62, %v365_v59  ;;  %299 = vadd.xlane.f32.xlu1 %v298_v46  ;;  %v377_v7 = vadd.f32 %v376_v63, %v370_v61 }
 0x2b1   :  { %v368_v9 = vadd.f32 %v367_v5, %v359_v3  ;;  %378 = vst.msk [vmem:[#allocation5] sm:$0x1] %vm26_vm12, %v377_v7 }
 0x2b3   :  { %369 = vst.msk [vmem:[#allocation4] sm:$0x1] %vm26_vm12, %v368_v9  ;;  %303 = vadd.xlane.f32.xlu1 %v302_v10 }
 0x2b7   :  { %398 = vadd.xlane.f32.xlu1 %v397_v1 }
 0x2b8   :  { %v418_v15 = vld [vmem:[#allocation5] sm:$0x1] }
 0x2b9   :  { %vm428_vm5 = vcmp.eq.f32.partialorder %v418_v15, 0.0  ;;  %v426_v30 = vmul.f32 %v425_v28, %v418_v15 }
 0x2ba   :  { %v429_v17 = vsel %vm428_vm5, 1.0, %v418_v15  ;;  %v423_v32 = vld [vmem:[#allocation4] sm:$0x1] }
 0x2bb   :  { %v427_v39 = vsub.f32 %v423_v32, %v426_v30 }
 0x334   :  { %v294_v14 = vpop.xlane.xlu1 %293 }
 0x335   :  { %v295_v2 = vadd.f32 1e-12, %v294_v14 }
 0x337   :  { %514 = vlog2.f32 %v295_v2 }
 0x338   :  { %v392_v16 = vpop.xlane.xlu1 %391 }
 0x339   :  { %516 = vlog2.f32 %v392_v16 }
 0x33a   :  { %518 = vrcp.f32 %v429_v17 }
 0x33c   :  { %v300_v18 = vpop.xlane.xlu1 %299 }
 0x33d   :  { %vm307_vm6 = vcmp.eq.f32.partialorder %v300_v18, 0.0 }
 0x33e   :  { %v308_v8 = vsel %vm307_vm6, 1.0, %v300_v18 }
 0x33f   :  { %520 = vrcp.f32 %v308_v8 }
 0x340   :  { %v304_v22 = vpop.xlane.xlu1 %303 }
 0x341   :  { %v515_v21 = vpop.eup %514 }
 0x342   :  { %v297_v23 = vmul.f32 0.6931472, %v515_v21 }
 0x343   :  { %v517_v24 = vpop.eup %516 }
 0x344   :  { %v394_v26 = vmul.f32 0.6931472, %v517_v24  ;;  %v305_v27 = vmul.f32 %v300_v18, %v297_v23  ;;  %v399_v31 = vpop.xlane.xlu1 %398  ;;  %v519_v33 = vpop.eup %518 }
 0x345   :  { %v431_v41 = vmul.f32 %v519_v33, %v427_v39 }
 0x346   :  { %v395_v29 = vadd.f32 %v394_v26, %v737_v37  ;;  %v306_v34 = vsub.f32 %v304_v22, %v305_v27 }
 0x347   :  { %v433_v42 = vsel %vm26_vm12, %v431_v41, 0.0 }
 0x348   :  { %v401_v35 = vsub.f32 %v395_v29, %v399_v31 }
 0x349   :  { %v521_v36 = vpop.eup %520 }
 0x34a   :  { %v402_v0 = vsel %vm312_vm7, %v401_v35, 0.0  ;;  %v310_v38 = vmul.f32 %v521_v36, %v306_v34 }
 0x34b   :  { %403 = vadd.xlane.f32.xlu0 %v402_v0 }
 0x34c   :  { %v313_v40 = vsel %vm312_vm7, %v310_v38, 0.0 }
 0x34d   :  { %314 = vadd.xlane.f32.xlu1 %v313_v40 }
 0x351   :  { %434 = vadd.xlane.f32.xlu1 %v433_v42 }
 0x3d8   :  { %v404_v43 = vpop.xlane.xlu0 %403 }
 0x3d9   :  { %v405_v37 = vrot.slane %v404_v43, 4 }
 0x3da   :  { %v315_v44 = vpop.xlane.xlu1 %314 }
 0x3db   :  { %v406_v45 = vadd.f32 %v405_v37, %v404_v43  ;;  %v316_v46 = vrot.slane %v315_v44, 4 }
 0x3dd   :  { %v407_v47 = vrot.slane %v406_v45, 2  ;;  %v317_v48 = vadd.f32 %v316_v46, %v315_v44 }
 0x3de   :  { %v435_v49 = vpop.xlane.xlu1 %434 }
 0x3df   :  { %v408_v50 = vadd.f32 %v407_v47, %v406_v45  ;;  %v318_v51 = vrot.slane %v317_v48, 2  ;;  %v436_v52 = vrot.slane %v435_v49, 4 }
 0x3e1   :  { %v437_v53 = vadd.f32 %v436_v52, %v435_v49  ;;  %v319_v54 = vadd.f32 %v318_v51, %v317_v48  ;;  %v409_v55 = vrot.slane %v408_v50, 1 }
 0x3e3   :  { %v438_v56 = vrot.slane %v437_v53, 2  ;;  %v320_v57 = vrot.slane %v319_v54, 1  ;;  %v410_v60 = vadd.f32 %v409_v55, %v408_v50 }
 0x3e5   :  { %v439_v58 = vadd.f32 %v438_v56, %v437_v53  ;;  %v321_v59 = vadd.f32 %v320_v57, %v319_v54 }
 0x3e7   :  { %481 = vpush %v321_v59  ;;  %v440_v61 = vrot.slane %v439_v58, 1 }
 0x3e8   :  { %483 = vpush %v410_v60 }
 0x3e9   :  { %v441_v62 = vadd.f32 %v440_v61, %v439_v58 }
 0x3eb   :  { %485 = vpush %v441_v62 }
 0x418   :  { %s482_s4 = spop %481 }
 0x419   :  { %s484_s7 = spop %483 }
 0x41a   :  { %s445_s8 = smul.f32 0.5, %s484_s7 }
 0x41c   :  { %s486_s9 = spop %485  ;;  %s446_s11 = smul.f32 0.125, %s445_s8 }
 0x41d   :  { %s443_s10 = sadd.f32 %s486_s9, %s482_s4 }
 0x41f   :  { %s447_s12 = smul.f32 0.03125, %s443_s10 }
 0x421   :  { %s448_s13 = ssub.f32 %s446_s11, %s447_s12 }
 0x423   :  { %450 = sst [smem:[#allocation7]] %s448_s13 }
 0x424   :  { %531 = shalt.err (!%p528_p2)
}
 0x425   :  { %s539_s20 = smov [#allocation7]  }
 0x426   :  { %458 = dma.smem_to_hbm %s539_s20, 16, %s777_s5, [#allocation8]  }
 0x427   :  { %532 = dma.done.wait [#allocation8], 16  }
 0x428   :  { %533 = vsyncadd [#allocation8], 4294967280 }
 0x429   :  { %462 = sfence }
 0x42a   :  { %463 = vsyncpa [#allocation8], 1 }

</bundles_post_ra>
